<compile_context>
chip_gen: v7x
topology: tpu7x:2x2x1
jax: 0.10.0
libtpu: 0.0.40
codegen_flags: <defaults>
</compile_context>

<pallas_src>
import functools

import jax
import jax.numpy as jnp
from jax.experimental import pallas as pl
from jax.experimental.pallas import tpu as pltpu


def _round_up(x, m):
    return ((x + m - 1) // m) * m


def _cdiv(a, b):
    return -(-a // b)


_NEG_BIG = -1e30  # bias for padded class lanes -> exp() == 0 in the softmax


def _vmem_limit_bytes():
    """Generation-aware VMEM budget with headroom; safe fallback off-TPU."""
    try:
        info = pltpu.get_tpu_info()
        cap = getattr(info, "vmem_capacity_bytes", None)
        if cap:
            return int(cap * 3) // 4          # leave 25% headroom
    except Exception:
        pass
    return 48 * 1024 * 1024                   # conservative (fits v7x's 64 MiB)


def _default_tile_n():
    # Bigger tiles on 128 MiB parts (v5e/v6e), smaller on v7x (64 MiB VMEM).
    return 1024 if _vmem_limit_bytes() >= 64 * 1024 * 1024 else 512


def _resident_spec(shape, index_map):
    """BlockSpec for a weight that is resident across the whole grid.

    Constant index_map => fetched once; request a single buffer so it is not
    needlessly double-buffered in VMEM.
    """
    try:
        return pl.BlockSpec(shape, index_map, pipeline_mode=pl.Buffered(1))
    except (TypeError, AttributeError):
        return pl.BlockSpec(shape, index_map)


def _prediction_head_kernel(h_ref, w1_ref, b1_ref, w2_ref, b2_ref,
                            logits_ref, probs_ref, *, num_classes):
    # One (tile_n, F_pad) row-tile of H per grid step; weights are full-array
    # resident blocks (constant index_map -> fetched once, single-buffered).
    x = h_ref[...]                                            # bf16, lane-padded

    # Linear(feat -> feat) + SiLU, f32 accumulation on the MXU.
    h1 = jnp.dot(x, w1_ref[...], preferred_element_type=jnp.float32) + b1_ref[...]
    h1 = h1 * jax.nn.sigmoid(h1)                              # SiLU in f32 (EUP)
    # TODO(synk): on v6e/v7x (bf16 EUP path) the SiLU could run in bf16 if the
    # bundle shows the EUP slot binding for small feat_dim.

    # Linear(feat -> C_pad): lane-dense 128-wide MXU output.
    logits = jnp.dot(h1.astype(w2_ref.dtype), w2_ref[...],
                     preferred_element_type=jnp.float32) + b2_ref[...]

    # Softmax over classes; padded class lanes carry a -1e30 bias so exp() == 0
    # there. Exact division (NOT approx vrcp) so rows sum to 1 in f32.
    m = jnp.max(logits, axis=-1, keepdims=True)
    e = jnp.exp(logits - m)
    denom = jnp.sum(e, axis=-1, keepdims=True)
    probs = e / denom

    # Store only the real class lanes: the HBM outputs have last dim == C,
    # cutting write amplification for small num_classes and avoiding a
    # post-kernel slice (the -1e30 pad lanes never leave the kernel).
    logits_ref[...] = logits[:, :num_classes].astype(logits_ref.dtype)
    probs_ref[...] = probs[:, :num_classes].astype(probs_ref.dtype)


def prepare_params(params, *, compute_dtype=jnp.bfloat16):
    """Pad + cast the MLP weights once; reuse the result across forward calls.

    Padded feature / hidden lanes are zero (contribute nothing); padded class
    lanes of b2 get -1e30 so the in-kernel softmax ignores them exactly.
    """
    w1, b1, w2, b2 = params
    F = w1.shape[0]
    C = w2.shape[1]
    F_pad = _round_up(F, 128)
    C_pad = _round_up(C, 128)

    w1p = jnp.zeros((F_pad, F_pad), compute_dtype).at[:F, :F].set(
        w1.astype(compute_dtype))
    b1p = jnp.zeros((1, F_pad), jnp.float32).at[:, :F].set(
        jnp.reshape(b1, (1, F)).astype(jnp.float32))
    w2p = jnp.zeros((F_pad, C_pad), compute_dtype).at[:F, :C].set(
        w2.astype(compute_dtype))
    b2p = jnp.full((1, C_pad), _NEG_BIG, jnp.float32).at[:, :C].set(
        jnp.reshape(b2, (1, C)).astype(jnp.float32))
    return dict(w1=w1p, b1=b1p, w2=w2p, b2=b2p, feat_dim=F, num_classes=C)


def prediction_head_forward(batch, H, prepared, *, tile_n=None,
                            compute_dtype=jnp.bfloat16,
                            out_dtype=jnp.float32):
    """Discrete PredictionHead forward: returns (logits, probs), shapes (N, C).

    `batch` is unused on the discrete path (kept for API parity with PyTorch).
    `prepared` is the output of prepare_params (padded weights are cached by
    the caller, not re-padded per call). Set out_dtype=jnp.bfloat16 to halve
    HBM writeback if downstream tolerates it (biggest win on v5e).
    """
    del batch
    w1p, b1p, w2p, b2p = prepared["w1"], prepared["b1"], prepared["w2"], prepared["b2"]
    F, C = prepared["feat_dim"], prepared["num_classes"]
    N = H.shape[0]
    assert H.shape[1] == F

    F_pad = w1p.shape[0]
    C_pad = w2p.shape[1]

    # Adaptive row tiling: 16-aligned (bf16 sublane packing) and sized so the
    # ragged tail wastes less than one full tile of compute / writeback.
    row_align = 16
    desired = tile_n if tile_n is not None else _default_tile_n()
    desired = max(row_align, min(int(desired), _round_up(N, row_align)))
    num_tiles = _cdiv(N, desired)
    tile_rows = _round_up(_cdiv(N, num_tiles), row_align)
    N_pad = num_tiles * tile_rows

    # Pad H only when actually needed (padded rows/features are zero and are
    # sliced off / contribute nothing).
    Hx = H.astype(compute_dtype)
    if (N_pad != N) or (F_pad != F):
        Hp = jnp.zeros((N_pad, F_pad), compute_dtype).at[:N, :F].set(Hx)
    else:
        Hp = Hx

    grid = (num_tiles,)

    in_specs = [
        pl.BlockSpec((tile_rows, F_pad), lambda i: (i, 0)),    # H row tile
        _resident_spec((F_pad, F_pad), lambda i: (0, 0)),      # W1 (resident)
        _resident_spec((1, F_pad), lambda i: (0, 0)),          # b1
        _resident_spec((F_pad, C_pad), lambda i: (0, 0)),      # W2 (resident)
        _resident_spec((1, C_pad), lambda i: (0, 0)),          # b2
    ]
    # Outputs: last dim == C (full array dim), so no padded class lanes ever
    # hit HBM and no post-kernel class slice is needed.
    out_specs = [
        pl.BlockSpec((tile_rows, C), lambda i: (i, 0)),        # logits
        pl.BlockSpec((tile_rows, C), lambda i: (i, 0)),        # probs
    ]

    out_isz = jnp.dtype(out_dtype).itemsize
    cdt_isz = jnp.dtype(compute_dtype).itemsize
    cost = pl.CostEstimate(
        flops=2 * N_pad * F_pad * (F_pad + C_pad),
        transcendentals=N_pad * (F_pad + C_pad),
        bytes_accessed=(N_pad * F_pad * cdt_isz            # H read
                        + F_pad * F_pad * cdt_isz          # W1
                        + F_pad * C_pad * cdt_isz          # W2
                        + (F_pad + C_pad) * 4              # biases
                        + 2 * N_pad * C * out_isz),        # logits + probs writes
    )

    kernel = functools.partial(_prediction_head_kernel, num_classes=C)

    logits_p, probs_p = pl.pallas_call(
        kernel,
        out_shape=(
            jax.ShapeDtypeStruct((N_pad, C), out_dtype),
            jax.ShapeDtypeStruct((N_pad, C), out_dtype),
        ),
        grid_spec=pltpu.PrefetchScalarGridSpec(
            num_scalar_prefetch=0,
            grid=grid,
            in_specs=in_specs,
            out_specs=out_specs,
        ),
        compiler_params=pltpu.CompilerParams(
            dimension_semantics=("parallel",),
            vmem_limit_bytes=_vmem_limit_bytes(),
        ),
        cost_estimate=cost,
    )(Hp, w1p, b1p, w2p, b2p)

    if N_pad != N:
        logits_p = logits_p[:N]
        probs_p = probs_p[:N]
    return logits_p, probs_p


def init_params(key, feat_dim, num_classes):
    """Deterministic init mirroring nn.Linear default (uniform +-1/sqrt(fan_in))."""
    k1, k2, k3, k4 = jax.random.split(key, 4)
    lim1 = 1.0 / jnp.sqrt(feat_dim)
    w1 = jax.random.uniform(k1, (feat_dim, feat_dim), jnp.float32, -lim1, lim1)
    b1 = jax.random.uniform(k2, (1, feat_dim), jnp.float32, -lim1, lim1)
    lim2 = 1.0 / jnp.sqrt(feat_dim)
    w2 = jax.random.uniform(k3, (feat_dim, num_classes), jnp.float32, -lim2, lim2)
    b2 = jax.random.uniform(k4, (1, num_classes), jnp.float32, -lim2, lim2)
    return (w1, b1, w2, b2)


if __name__ == "__main__":
    N = 200            # number of nodes (ragged vs. tile size on purpose)
    feat_dim = 32
    num_classes = 8

    key = jax.random.PRNGKey(0)
    k_h, k_p = jax.random.split(key)
    H = jax.random.normal(k_h, (N, feat_dim), jnp.float32)
    batch = jnp.zeros((N,), jnp.int32)   # single-graph batch indices (unused)

    params = init_params(k_p, feat_dim, num_classes)
    prepared = prepare_params(params)    # pad/cast weights ONCE, reuse per call

    logits, probs = prediction_head_forward(batch, H, prepared)
    jax.block_until_ready((logits, probs))

    # Reference in plain JAX, mirroring the kernel's bf16 MXU inputs / f32 accumulation.
    w1, b1, w2, b2 = params
    bf = jnp.bfloat16
    h1 = jnp.dot(H.astype(bf), w1.astype(bf),
                 preferred_element_type=jnp.float32) + b1
    h1 = h1 * jax.nn.sigmoid(h1)
    logits_ref = jnp.dot(h1.astype(bf), w2.astype(bf),
                         preferred_element_type=jnp.float32) + b2
    probs_ref = jax.nn.softmax(logits_ref, axis=-1)

    assert logits.shape == (N, num_classes) and probs.shape == (N, num_classes)
    assert jnp.allclose(logits, logits_ref, atol=1e-3, rtol=1e-3), "logits mismatch"
    assert jnp.allclose(probs, probs_ref, atol=2e-3, rtol=2e-3), "probs mismatch"
    assert jnp.allclose(jnp.sum(probs, axis=-1), 1.0, atol=1e-3), "probs not normalized"

    print("KERNEL_OK")
</pallas_src>

<mosaic_0001>
module attributes {stable_mosaic.version = 11 : i64} {
  func.func @_prediction_head_kernel(%arg0: i32, %arg1: memref<208x128xbf16, #tpu.memory_space<vmem>>, %arg2: memref<128x128xbf16, #tpu.memory_space<vmem>>, %arg3: memref<1x128xf32, #tpu.memory_space<vmem>>, %arg4: memref<128x128xbf16, #tpu.memory_space<vmem>>, %arg5: memref<1x128xf32, #tpu.memory_space<vmem>>, %arg6: memref<208x8xf32, #tpu.memory_space<vmem>>, %arg7: memref<208x8xf32, #tpu.memory_space<vmem>>) attributes {dimension_semantics = [#tpu.dimension_semantics<parallel>], iteration_bounds = array<i64: 1>, scalar_prefetch = 0 : i64, scratch_operands = 0 : i64, tpu.core_type = #tpu.core_type<tc>, window_params = [{transform_indices = @transform_0, window_bounds = array<i64: 208, 128>}, {pipeline_mode = #tpu.pipeline_mode<synchronous>, transform_indices = @transform_1, window_bounds = array<i64: 128, 128>}, {pipeline_mode = #tpu.pipeline_mode<synchronous>, transform_indices = @transform_2, window_bounds = array<i64: 1, 128>}, {pipeline_mode = #tpu.pipeline_mode<synchronous>, transform_indices = @transform_3, window_bounds = array<i64: 128, 128>}, {pipeline_mode = #tpu.pipeline_mode<synchronous>, transform_indices = @transform_4, window_bounds = array<i64: 1, 128>}, {transform_indices = @transform_5, window_bounds = array<i64: 208, 8>}, {transform_indices = @transform_6, window_bounds = array<i64: 208, 8>}]} {
    %c0 = arith.constant 0 : index
    %c0_0 = arith.constant 0 : index
    %0 = vector.load %arg1[%c0, %c0_0] : memref<208x128xbf16, #tpu.memory_space<vmem>>, vector<208x128xbf16>
    %c0_1 = arith.constant 0 : index
    %c0_2 = arith.constant 0 : index
    %1 = vector.load %arg2[%c0_1, %c0_2] : memref<128x128xbf16, #tpu.memory_space<vmem>>, vector<128x128xbf16>
    %cst = arith.constant dense<0.000000e+00> : vector<208x128xf32>
    %2 = tpu.matmul %0, %1, %cst {dimension_numbers = #tpu.dot_dimension_numbers<[1], [0], [0], [1], [0, 0, 1, 1], [], []>} : vector<208x128xbf16>, vector<128x128xbf16>, vector<208x128xf32> -> vector<208x128xf32>
    %c0_3 = arith.constant 0 : index
    %c0_4 = arith.constant 0 : index
    %3 = vector.load %arg3[%c0_3, %c0_4] : memref<1x128xf32, #tpu.memory_space<vmem>>, vector<1x128xf32>
    %4 = vector.broadcast %3 : vector<1x128xf32> to vector<208x128xf32>
    %5 = arith.addf %2, %4 : vector<208x128xf32>
    %6 = arith.negf %5 : vector<208x128xf32>
    %7 = math.exp %6 : vector<208x128xf32>
    %cst_5 = arith.constant 1.000000e+00 : f32
    %8 = vector.broadcast %cst_5 : f32 to vector<208x128xf32>
    %9 = arith.addf %8, %7 : vector<208x128xf32>
    %10 = arith.divf %8, %9 : vector<208x128xf32>
    %11 = arith.mulf %5, %10 : vector<208x128xf32>
    %12 = arith.truncf %11 : vector<208x128xf32> to vector<208x128xbf16>
    %c0_6 = arith.constant 0 : index
    %c0_7 = arith.constant 0 : index
    %13 = vector.load %arg4[%c0_6, %c0_7] : memref<128x128xbf16, #tpu.memory_space<vmem>>, vector<128x128xbf16>
    %cst_8 = arith.constant dense<0.000000e+00> : vector<208x128xf32>
    %14 = tpu.matmul %12, %13, %cst_8 {dimension_numbers = #tpu.dot_dimension_numbers<[1], [0], [0], [1], [0, 0, 1, 1], [], []>} : vector<208x128xbf16>, vector<128x128xbf16>, vector<208x128xf32> -> vector<208x128xf32>
    %c0_9 = arith.constant 0 : index
    %c0_10 = arith.constant 0 : index
    %15 = vector.load %arg5[%c0_9, %c0_10] : memref<1x128xf32, #tpu.memory_space<vmem>>, vector<1x128xf32>
    %16 = vector.broadcast %15 : vector<1x128xf32> to vector<208x128xf32>
    %17 = arith.addf %14, %16 : vector<208x128xf32>
    %cst_11 = arith.constant dense<0xFF800000> : vector<208xf32>
    %18 = vector.multi_reduction <maximumf>, %17, %cst_11 [1] : vector<208x128xf32> to vector<208xf32>
    %19 = vector.shape_cast %18 : vector<208xf32> to vector<208x1xf32>
    %20 = vector.broadcast %19 : vector<208x1xf32> to vector<208x128xf32>
    %21 = arith.subf %17, %20 : vector<208x128xf32>
    %22 = math.exp %21 : vector<208x128xf32>
    %cst_12 = arith.constant dense<0.000000e+00> : vector<208xf32>
    %23 = vector.multi_reduction <add>, %22, %cst_12 [1] : vector<208x128xf32> to vector<208xf32>
    %24 = vector.shape_cast %23 : vector<208xf32> to vector<208x1xf32>
    %25 = vector.broadcast %24 : vector<208x1xf32> to vector<208x128xf32>
    %26 = arith.divf %22, %25 : vector<208x128xf32>
    %27 = vector.extract_strided_slice %17 {offsets = [0, 0], sizes = [208, 8], strides = [1, 1]} : vector<208x128xf32> to vector<208x8xf32>
    %c0_13 = arith.constant 0 : index
    %c0_14 = arith.constant 0 : index
    %28 = vector.load %arg6[%c0_13, %c0_14] : memref<208x8xf32, #tpu.memory_space<vmem>>, vector<208x8xf32>
    tpu.vector_store %arg6[%c0_13, %c0_14], %27 {strides = array<i32>} : memref<208x8xf32, #tpu.memory_space<vmem>>, vector<208x8xf32>,
    %29 = vector.extract_strided_slice %26 {offsets = [0, 0], sizes = [208, 8], strides = [1, 1]} : vector<208x128xf32> to vector<208x8xf32>
    %c0_15 = arith.constant 0 : index
    %c0_16 = arith.constant 0 : index
    %30 = vector.load %arg7[%c0_15, %c0_16] : memref<208x8xf32, #tpu.memory_space<vmem>>, vector<208x8xf32>
    tpu.vector_store %arg7[%c0_15, %c0_16], %29 {strides = array<i32>} : memref<208x8xf32, #tpu.memory_space<vmem>>, vector<208x8xf32>,
    return
  }
  func.func @transform_0(%arg0: i32) -> (i32, i32) {
    %c0_i32 = arith.constant 0 : i32
    %c0_i32_0 = arith.constant 0 : i32
    return %arg0, %c0_i32 : i32, i32
  }
  func.func @transform_1(%arg0: i32) -> (i32, i32) {
    %c0_i32 = arith.constant 0 : i32
    %c0_i32_0 = arith.constant 0 : i32
    %c0_i32_1 = arith.constant 0 : i32
    return %c0_i32, %c0_i32_0 : i32, i32
  }
  func.func @transform_2(%arg0: i32) -> (i32, i32) {
    %c0_i32 = arith.constant 0 : i32
    %c0_i32_0 = arith.constant 0 : i32
    %c0_i32_1 = arith.constant 0 : i32
    return %c0_i32, %c0_i32_0 : i32, i32
  }
  func.func @transform_3(%arg0: i32) -> (i32, i32) {
    %c0_i32 = arith.constant 0 : i32
    %c0_i32_0 = arith.constant 0 : i32
    %c0_i32_1 = arith.constant 0 : i32
    return %c0_i32, %c0_i32_0 : i32, i32
  }
  func.func @transform_4(%arg0: i32) -> (i32, i32) {
    %c0_i32 = arith.constant 0 : i32
    %c0_i32_0 = arith.constant 0 : i32
    %c0_i32_1 = arith.constant 0 : i32
    return %c0_i32, %c0_i32_0 : i32, i32
  }
  func.func @transform_5(%arg0: i32) -> (i32, i32) {
    %c0_i32 = arith.constant 0 : i32
    %c0_i32_0 = arith.constant 0 : i32
    return %arg0, %c0_i32 : i32, i32
  }
  func.func @transform_6(%arg0: i32) -> (i32, i32) {
    %c0_i32 = arith.constant 0 : i32
    %c0_i32_0 = arith.constant 0 : i32
    return %arg0, %c0_i32 : i32, i32
  }
}

</mosaic_0001>

<bundles_post_ra>
// kernel: tpu_custom_call.1
= control target key start
LH: loop header
LB: loop body
LE: loop exit
PB: predicated region body
PF: predicated region fallthrough
CT: control target
= control target key end

     0   :  { %12 = vsyncpa [#allocation3], 0  ;;  %s2375_s0 = inlined_call_operand.hbm [shape: bf16[208,128], index: 0, kind: input, shape index: {}]   ;;  %s2376_s1 = inlined_call_operand.hbm [shape: bf16[128,128], index: 1, kind: input, shape index: {}]   ;;  %s2377_s2 = inlined_call_operand.vmem [shape: f32[1,128], index: 2, kind: input, shape index: {}]   ;;  %s2378_s3 = inlined_call_operand.hbm [shape: bf16[128,128], index: 3, kind: input, shape index: {}]   ;;  %s2379_s4 = inlined_call_operand.vmem [shape: f32[1,128], index: 4, kind: input, shape index: {}]   ;;  %s2380_s5 = inlined_call_operand.vmem [shape: f32[208,8], index: 5, kind: output, shape index: {0}]   ;;  %s2381_s6 = inlined_call_operand.vmem [shape: f32[208,8], index: 6, kind: output, shape index: {1}]  }
   0x1   :  { %13 = vsyncpa [#allocation5], 0  ;;  %s1625_s21 = smov [#allocation4]   ;;  %s1626_s23 = smov [#allocation2]  }
   0x2   :  { %s31_s22 = sshll.u32 %s1625_s21, 4  ;;  %s19_s24 = sshll.u32 %s1626_s23, 4  ;;  %s32_s22 = int_to_ptr.vmem [resolvable:$true] %s31_s22  ;;  %s1667_s24 = int_to_ptr.vmem [resolvable:$true] %s19_s24 }
   0x3   :  { %s1555_s27 = scalar_lea.hbm %s2376_s1, 1024 }
   0x4   :  { %p1556_p0 = scmp.ne.s32.totalorder %s2376_s1, %s1555_s27  ;;  %p1559_p1 = scmp.lt.u32.totalorder %s1555_s27, %s2376_s1 }
   0x6   :  { %p1561_p2 = pnand %p1559_p1, %p1556_p0 }
   0x8   :  { %1564 = shalt.err (!%p1561_p2)
}
   0x9   :  { %s1565_s8 = scalar_lea.vmem %s32_s22, 1024  ;;  %p1570_p4 = scmp.lt.s32.totalorder %s32_s22, %s32_s22 }
   0xa   :  { %p1566_p3 = scmp.ne.s32.totalorder %s32_s22, %s1565_s8  ;;  %p1571_p5 = scmp.lt.s32.totalorder %s1565_s8, %s1565_s8 }
   0xc   :  { %p1572_p6 = por %p1571_p5, %p1570_p4 }
   0xe   :  { %p1573_p7 = pnand %p1572_p6, %p1566_p3 }
  0x10   :  { %1576 = shalt.err (!%p1573_p7)
}
  0x11   :  { %s1627_s9 = smov 64   ;;  %s1628_s10 = smov 4  }
  0x12   :  { %37 = dma.hbm_to_vmem [thread:$0]  %s2376_s1, 1024, %s32_s22, [#allocation5], %s1627_s9, %s1627_s9, %s1628_s10  }
  0x13   :  { %s1577_s15 = scalar_lea.hbm %s2375_s0, 1664 }
  0x14   :  { %p1578_p8 = scmp.ne.s32.totalorder %s2375_s0, %s1577_s15  ;;  %p1581_p9 = scmp.lt.u32.totalorder %s1577_s15, %s2375_s0 }
  0x16   :  { %p1583_p10 = pnand %p1581_p9, %p1578_p8 }
  0x18   :  { %1586 = shalt.err (!%p1583_p10)
}
  0x19   :  { %s1587_s20 = scalar_lea.vmem %s1667_s24, 1664  ;;  %p1592_p12 = scmp.lt.s32.totalorder %s1667_s24, %s1667_s24 }
  0x1a   :  { %p1588_p11 = scmp.ne.s32.totalorder %s1667_s24, %s1587_s20  ;;  %p1593_p13 = scmp.lt.s32.totalorder %s1587_s20, %s1587_s20 }
  0x1c   :  { %p1594_p0 = por %p1593_p13, %p1592_p12 }
  0x1e   :  { %p1595_p1 = pnand %p1594_p0, %p1588_p11 }
  0x20   :  { %1598 = shalt.err (!%p1595_p1)
}
  0x21   :  { %25 = dma.hbm_to_vmem [thread:$0]  %s2375_s0, 1664, %s1667_s24, [#allocation3], %s1627_s9, %s1627_s9, %s1628_s10  }
  0x22   :  { %s1629_s22 = smov [#allocation6]   ;;  %s1599_s27 = scalar_lea.hbm %s2378_s3, 1024 }
  0x23   :  { %s45_s23 = sshll.u32 %s1629_s22, 4  ;;  %p1600_p2 = scmp.ne.s32.totalorder %s2378_s3, %s1599_s27  ;;  %s46_s23 = int_to_ptr.vmem [resolvable:$true] %s45_s23 }
  0x24   :  { %p1603_p3 = scmp.lt.u32.totalorder %s1599_s27, %s2378_s3 }
  0x26   :  { %p1605_p4 = pnand %p1603_p3, %p1600_p2 }
  0x28   :  { %1608 = shalt.err (!%p1605_p4)
}
  0x29   :  { %s1609_s8 = scalar_lea.vmem %s46_s23, 1024  ;;  %p1614_p6 = scmp.lt.s32.totalorder %s46_s23, %s46_s23 }
  0x2a   :  { %p1610_p5 = scmp.ne.s32.totalorder %s46_s23, %s1609_s8  ;;  %p1615_p7 = scmp.lt.s32.totalorder %s1609_s8, %s1609_s8 }
  0x2c   :  { %p1616_p8 = por %p1615_p7, %p1614_p6 }
  0x2e   :  { %p1617_p9 = pnand %p1616_p8, %p1610_p5 }
  0x30   :  { %1620 = shalt.err (!%p1617_p9)
}
  0x31   :  { %51 = dma.hbm_to_vmem [thread:$0]  %s2378_s3, 1024, %s46_s23, [#allocation5], %s1627_s9, %s1627_s9, %s1628_s10  }
  0x32   :  { %1621 = dma.done.wait [#allocation3], 1664  }
  0x33   :  { %1622 = vsyncadd [#allocation3], 4294965632 }
  0x34   :  { %1623 = dma.done.wait [#allocation5], 2048  }
  0x35   :  { %1624 = vsyncadd [#allocation5], 4294965248  ;;  %v1630_v0 = vmov 0.0   ;;  %vm1631_vm0 = vmmov 0   ;;  %v1318_v1 = vld [vmem:[#allocation4] sm:$0xff]   ;;  %v1319_v2 = vld [vmem:[#allocation4 + $0x8] sm:$0xff]  }
  0x36   :  { %1175 = vmatprep.subr.bf16.mxu0 %v1630_v0  ;;  %1191 = vmatprep.mubr.msk.bf16.mxu0 %vm1631_vm0, %v1630_v0  ;;  %v1320_v3 = vld [vmem:[#allocation4 + $0x10] sm:$0xff]   ;;  %v1321_v4 = vld [vmem:[#allocation4 + $0x18] sm:$0xff]   ;;  %v1322_v5 = vld [vmem:[#allocation4 + $0x20] sm:$0xff]   ;;  %vm1013_vm1 = vcmask 64512  }
  0x37   :  { %1243 = vmatprep.subr.bf16.mxu1 %v1630_v0  ;;  %1259 = vmatprep.mubr.msk.bf16.mxu1 %vm1631_vm0, %v1630_v0  ;;  %v1323_v6 = vld [vmem:[#allocation4 + $0x28] sm:$0xff]   ;;  %v1324_v7 = vld [vmem:[#allocation4 + $0x30] sm:$0xff]   ;;  %v1325_v8 = vld [vmem:[#allocation4 + $0x38] sm:$0xff]  }
  0x38   :  { %1176 = vmatpush3.bf16.msra.mxu0 %v1318_v1  ;;  %v1326_v9 = vld [vmem:[#allocation2] sm:$0xff]   ;;  %v1327_v10 = vld [vmem:[#allocation2 + $0x8] sm:$0xff]   ;;  %v1328_v11 = vld [vmem:[#allocation2 + $0x10] sm:$0xff]  }
  0x39   :  { %1177 = vmatprep.subr.bf16.mxu0 %v1630_v0  ;;  %v1329_v12 = vld [vmem:[#allocation2 + $0x18] sm:$0xff]   ;;  %v1330_v13 = vld [vmem:[#allocation2 + $0x20] sm:$0xff]   ;;  %v1331_v14 = vld [vmem:[#allocation2 + $0x28] sm:$0xff]  }
  0x3a   :  { %v1332_v15 = vld [vmem:[#allocation2 + $0x30] sm:$0xff]   ;;  %v1333_v16 = vld [vmem:[#allocation2 + $0x38] sm:$0xff]   ;;  %v1334_v17 = vld [vmem:[#allocation2 + $0x40] sm:$0xff]  }
  0x3b   :  { %v1335_v18 = vld [vmem:[#allocation2 + $0x48] sm:$0xff]   ;;  %v1336_v19 = vld [vmem:[#allocation2 + $0x50] sm:$0xff]   ;;  %v1337_v20 = vld [vmem:[#allocation2 + $0x58] sm:$0xff]  }
  0x3c   :  { %1178 = vmatpush3.bf16.msra.mxu0 %v1319_v2  ;;  %v1339_v21 = vld [vmem:[#allocation6] sm:$0xff]   ;;  %v1340_v22 = vld [vmem:[#allocation6 + $0x8] sm:$0xff]   ;;  %v1338_v23 = vld [vmem:[#allocation2 + $0x60] sm:$0xff]  }
  0x3d   :  { %1179 = vmatprep.subr.bf16.mxu0 %v1630_v0  ;;  %1244 = vmatpush3.bf16.msra.mxu1 %v1339_v21  ;;  %v1341_v24 = vld [vmem:[#allocation6 + $0x10] sm:$0xff]   ;;  %v1342_v25 = vld [vmem:[#allocation6 + $0x18] sm:$0xff]   ;;  %v1343_v26 = vld [vmem:[#allocation6 + $0x20] sm:$0xff]  }
  0x3e   :  { %1245 = vmatprep.subr.bf16.mxu1 %v1630_v0  ;;  %v1344_v27 = vld [vmem:[#allocation6 + $0x28] sm:$0xff]   ;;  %v1345_v28 = vld [vmem:[#allocation6 + $0x30] sm:$0xff]   ;;  %v1346_v29 = vld [vmem:[#allocation6 + $0x38] sm:$0xff]  }
  0x3f   :  { %v1766_v30 = vld [vmem:[%s2377_s2] ss:$0 sm:$0xff] }
  0x40   :  { %1180 = vmatpush3.bf16.msra.mxu0 %v1320_v3 }
  0x41   :  { %1181 = vmatprep.subr.bf16.mxu0 %v1630_v0  ;;  %1246 = vmatpush3.bf16.msra.mxu1 %v1340_v22 }
  0x42   :  { %1247 = vmatprep.subr.bf16.mxu1 %v1630_v0 }
  0x44   :  { %1182 = vmatpush3.bf16.msra.mxu0 %v1321_v4 }
  0x45   :  { %1183 = vmatprep.subr.bf16.mxu0 %v1630_v0  ;;  %1248 = vmatpush3.bf16.msra.mxu1 %v1341_v24 }
  0x46   :  { %1249 = vmatprep.subr.bf16.mxu1 %v1630_v0 }
  0x48   :  { %1184 = vmatpush3.bf16.msra.mxu0 %v1322_v5 }
  0x49   :  { %1185 = vmatprep.subr.bf16.mxu0 %v1630_v0  ;;  %1250 = vmatpush3.bf16.msra.mxu1 %v1342_v25 }
  0x4a   :  { %1251 = vmatprep.subr.bf16.mxu1 %v1630_v0 }
  0x4c   :  { %1186 = vmatpush3.bf16.msra.mxu0 %v1323_v6 }
  0x4d   :  { %1187 = vmatprep.subr.bf16.mxu0 %v1630_v0  ;;  %1252 = vmatpush3.bf16.msra.mxu1 %v1343_v26 }
  0x4e   :  { %1253 = vmatprep.subr.bf16.mxu1 %v1630_v0 }
  0x50   :  { %1188 = vmatpush3.bf16.msra.mxu0 %v1324_v7 }
  0x51   :  { %1189 = vmatprep.subr.bf16.mxu0 %v1630_v0  ;;  %1254 = vmatpush3.bf16.msra.mxu1 %v1344_v27 }
  0x52   :  { %1255 = vmatprep.subr.bf16.mxu1 %v1630_v0 }
  0x54   :  { %1190 = vmatpush3.bf16.msra.mxu0 %v1325_v8 }
  0x55   :  { %1256 = vmatpush3.bf16.msra.mxu1 %v1345_v28 }
  0x56   :  { %1257 = vmatprep.subr.bf16.mxu1 %v1630_v0 }
  0x57   :  { %1192 = vmatmul.mubr.bf16.vlgmr.msra.gmra.mrb[0].mxu0 %v1326_v9 }
  0x58   :  { %1195 = vmatprep.mubr.msk.bf16.mxu0 %vm1631_vm0, %v1630_v0 }
  0x59   :  { %1258 = vmatpush3.bf16.msra.mxu1 %v1346_v29 }
  0x5f   :  { %1196 = vmatmul.mubr.bf16.gmra.mrb[4].mxu0 %v1327_v10 }
  0x60   :  { %1199 = vmatprep.mubr.msk.bf16.mxu0 %vm1631_vm0, %v1630_v0 }
  0x67   :  { %1200 = vmatmul.mubr.bf16.gmra.mrb[8].mxu0 %v1328_v11 }
  0x68   :  { %1203 = vmatprep.mubr.msk.bf16.mxu0 %vm1631_vm0, %v1630_v0 }
  0x6f   :  { %1204 = vmatmul.mubr.bf16.gmra.mrb[12].mxu0 %v1329_v12 }
  0x70   :  { %1207 = vmatprep.mubr.msk.bf16.mxu0 %vm1631_vm0, %v1630_v0 }
  0x77   :  { %1208 = vmatmul.mubr.bf16.gmra.mrb[16].mxu0 %v1330_v13 }
  0x78   :  { %1211 = vmatprep.mubr.msk.bf16.mxu0 %vm1631_vm0, %v1630_v0 }
  0x7f   :  { %1212 = vmatmul.mubr.bf16.gmra.mrb[20].mxu0 %v1331_v14 }
  0x80   :  { %1215 = vmatprep.mubr.msk.bf16.mxu0 %vm1631_vm0, %v1630_v0 }
  0x87   :  { %1216 = vmatmul.mubr.bf16.gmra.mrb[24].mxu0 %v1332_v15 }
  0x88   :  { %1219 = vmatprep.mubr.msk.bf16.mxu0 %vm1631_vm0, %v1630_v0 }
  0x8f   :  { %1220 = vmatmul.mubr.bf16.gmra.mrb[28].mxu0 %v1333_v16 }
  0x90   :  { %1223 = vmatprep.mubr.msk.bf16.mxu0 %vm1631_vm0, %v1630_v0 }
  0x97   :  { %1224 = vmatmul.mubr.bf16.gmra.mrb[32].mxu0 %v1334_v17 }
  0x98   :  { %1227 = vmatprep.mubr.msk.bf16.mxu0 %vm1631_vm0, %v1630_v0 }
  0x9f   :  { %1228 = vmatmul.mubr.bf16.gmra.mrb[36].mxu0 %v1335_v18 }
  0xa0   :  { %1231 = vmatprep.mubr.msk.bf16.mxu0 %vm1631_vm0, %v1630_v0 }
  0xa7   :  { %1232 = vmatmul.mubr.bf16.gmra.mrb[40].mxu0 %v1336_v19 }
  0xa8   :  { %1235 = vmatprep.mubr.msk.bf16.mxu0 %vm1631_vm0, %v1630_v0 }
  0xaf   :  { %1236 = vmatmul.mubr.bf16.gmra.mrb[44].mxu0 %v1337_v20 }
  0xb0   :  { %1239 = vmatprep.mubr.msk.bf16.mxu0 %vm1631_vm0, %v1630_v0 }
  0xb7   :  { %1240 = vmatmul.mubr.bf16.gmra.mrb[48].mxu0 %v1338_v23 }
 0x12a   :  { %v273_v31 = vpop.f32.mrb[0].mxu0 }
 0x12b   :  { %v274_v32 = vadd.f32 %v1766_v30, %v273_v31  ;;  %v1193_v33 = vpop.f32.mrb[1].mxu0 }
 0x12c   :  { %v276_v34 = vpop.f32.mrb[2].mxu0 }
 0x12d   :  { %v1098_v35 = vmul.f32 -1.442695, %v274_v32  ;;  %v277_v36 = vadd.f32 %v1766_v30, %v276_v34  ;;  %v1194_v37 = vpop.f32.mrb[3].mxu0 }
 0x12f   :  { %1347 = vpow2.f32 %v1098_v35  ;;  %v1099_v38 = vmul.f32 -1.442695, %v277_v36 }
 0x131   :  { %1349 = vpow2.f32 %v1099_v38 }
 0x132   :  { %v281_v39 = vpop.f32.mrb[4].mxu0 }
 0x133   :  { %v1771_v40 = vadd.f32 %v1766_v30, %v281_v39  ;;  %v1197_v41 = vpop.f32.mrb[5].mxu0 }
 0x134   :  { %v284_v42 = vpop.f32.mrb[6].mxu0 }
 0x135   :  { %v1100_v43 = vmul.f32 -1.442695, %v1771_v40  ;;  %v1775_v44 = vadd.f32 %v1766_v30, %v284_v42  ;;  %v1198_v45 = vpop.f32.mrb[7].mxu0 }
 0x137   :  { %1351 = vpow2.f32 %v1100_v43  ;;  %v1101_v46 = vmul.f32 -1.442695, %v1775_v44 }
 0x139   :  { %v1348_v47 = vpop.eup %1347  ;;  %1353 = vpow2.f32 %v1101_v46 }
 0x13a   :  { %v454_v48 = vadd.f32 1.0, %v1348_v47  ;;  %v289_v49 = vpop.f32.mrb[8].mxu0 }
 0x13b   :  { %v1350_v50 = vpop.eup %1349  ;;  %v1779_v51 = vadd.f32 %v1766_v30, %v289_v49  ;;  %v1201_v52 = vpop.f32.mrb[9].mxu0 }
 0x13c   :  { %1355 = vrcp.f32 %v454_v48  ;;  %v455_v53 = vadd.f32 1.0, %v1350_v50  ;;  %v292_v54 = vpop.f32.mrb[10].mxu0 }
 0x13d   :  { %v1102_v55 = vmul.f32 -1.442695, %v1779_v51  ;;  %v1783_v56 = vadd.f32 %v1766_v30, %v292_v54  ;;  %v1202_v57 = vpop.f32.mrb[11].mxu0 }
 0x13e   :  { %1357 = vrcp.f32 %v455_v53 }
 0x13f   :  { %1359 = vpow2.f32 %v1102_v55  ;;  %v1103_v58 = vmul.f32 -1.442695, %v1783_v56 }
 0x141   :  { %v1352_v59 = vpop.eup %1351  ;;  %1361 = vpow2.f32 %v1103_v58 }
 0x142   :  { %v456_v60 = vadd.f32 1.0, %v1352_v59  ;;  %v297_v61 = vpop.f32.mrb[12].mxu0 }
 0x143   :  { %v1354_v62 = vpop.eup %1353  ;;  %v1787_v63 = vadd.f32 %v1766_v30, %v297_v61  ;;  %v1205_v1 = vpop.f32.mrb[13].mxu0 }
 0x144   :  { %1363 = vrcp.f32 %v456_v60  ;;  %v457_v2 = vadd.f32 1.0, %v1354_v62  ;;  %v300_v3 = vpop.f32.mrb[14].mxu0 }
 0x145   :  { %v1104_v4 = vmul.f32 -1.442695, %v1787_v63  ;;  %v1791_v5 = vadd.f32 %v1766_v30, %v300_v3  ;;  %v1206_v6 = vpop.f32.mrb[15].mxu0 }
 0x146   :  { %v1356_v7 = vpop.eup %1355  ;;  %1365 = vrcp.f32 %v457_v2 }
 0x147   :  { %1367 = vpow2.f32 %v1104_v4  ;;  %v1105_v8 = vmul.f32 -1.442695, %v1791_v5  ;;  %v532_v11 = vmul.f32 %v1356_v7, %v274_v32 }
 0x148   :  { %v1358_v9 = vpop.eup %1357 }
 0x149   :  { %v1360_v10 = vpop.eup %1359  ;;  %v533_v12 = vmul.f32 %v1358_v9, %v277_v36  ;;  %1369 = vpow2.f32 %v1105_v8 }
 0x14a   :  { %v458_v13 = vadd.f32 1.0, %v1360_v10  ;;  %v305_v14 = vpop.f32.mrb[16].mxu0 }
 0x14b   :  { %v1362_v15 = vpop.eup %1361  ;;  %v1795_v16 = vadd.f32 %v1766_v30, %v305_v14  ;;  %v1209_v17 = vpop.f32.mrb[17].mxu0  ;;  %v558_v18 = vpack.c.bf16 %v533_v12, %v532_v11 }
 0x14c   :  { %1371 = vrcp.f32 %v458_v13  ;;  %v459_v19 = vadd.f32 1.0, %v1362_v15  ;;  %v308_v20 = vpop.f32.mrb[18].mxu0 }
 0x14d   :  { %v1106_v21 = vmul.f32 -1.442695, %v1795_v16  ;;  %v1799_v22 = vadd.f32 %v1766_v30, %v308_v20  ;;  %v1210_v23 = vpop.f32.mrb[19].mxu0  ;;  %1260 = vmatmul.mubr.bf16.vlgmr.msra.gmra.mrb[0].mxu1 %v558_v18 }
 0x14e   :  { %v1364_v24 = vpop.eup %1363  ;;  %1373 = vrcp.f32 %v459_v19  ;;  %1263 = vmatprep.mubr.msk.bf16.mxu1 %vm1631_vm0, %v1630_v0 }
 0x14f   :  { %1375 = vpow2.f32 %v1106_v21  ;;  %v1107_v25 = vmul.f32 -1.442695, %v1799_v22  ;;  %v534_v28 = vmul.f32 %v1364_v24, %v1771_v40 }
 0x150   :  { %v1366_v26 = vpop.eup %1365 }
 0x151   :  { %v1368_v27 = vpop.eup %1367  ;;  %v535_v29 = vmul.f32 %v1366_v26, %v1775_v44  ;;  %1377 = vpow2.f32 %v1107_v25 }
 0x152   :  { %v460_v31 = vadd.f32 1.0, %v1368_v27  ;;  %v313_v32 = vpop.f32.mrb[20].mxu0 }
 0x153   :  { %v1370_v33 = vpop.eup %1369  ;;  %v1807_v34 = vadd.f32 %v1766_v30, %v313_v32  ;;  %v1213_v35 = vpop.f32.mrb[21].mxu0  ;;  %v559_v36 = vpack.c.bf16 %v535_v29, %v534_v28 }
 0x154   :  { %1379 = vrcp.f32 %v460_v31  ;;  %v461_v37 = vadd.f32 1.0, %v1370_v33  ;;  %v316_v38 = vpop.f32.mrb[22].mxu0 }
 0x155   :  { %v1108_v39 = vmul.f32 -1.442695, %v1807_v34  ;;  %v1811_v41 = vadd.f32 %v1766_v30, %v316_v38  ;;  %v1214_v40 = vpop.f32.mrb[23].mxu0  ;;  %1264 = vmatmul.mubr.bf16.gmra.mrb[4].mxu1 %v559_v36 }
 0x156   :  { %v1372_v42 = vpop.eup %1371  ;;  %1381 = vrcp.f32 %v461_v37  ;;  %1267 = vmatprep.mubr.msk.bf16.mxu1 %vm1631_vm0, %v1630_v0 }
 0x157   :  { %1383 = vpow2.f32 %v1108_v39  ;;  %v1109_v43 = vmul.f32 -1.442695, %v1811_v41  ;;  %v536_v46 = vmul.f32 %v1372_v42, %v1779_v51 }
 0x158   :  { %v1374_v44 = vpop.eup %1373 }
 0x159   :  { %v1376_v45 = vpop.eup %1375  ;;  %v537_v47 = vmul.f32 %v1374_v44, %v1783_v56  ;;  %1385 = vpow2.f32 %v1109_v43 }
 0x15a   :  { %v462_v48 = vadd.f32 1.0, %v1376_v45  ;;  %v321_v49 = vpop.f32.mrb[24].mxu0 }
 0x15b   :  { %v1378_v50 = vpop.eup %1377  ;;  %v1819_v52 = vadd.f32 %v1766_v30, %v321_v49  ;;  %v1217_v53 = vpop.f32.mrb[25].mxu0  ;;  %v560_v54 = vpack.c.bf16 %v537_v47, %v536_v46 }
 0x15c   :  { %1387 = vrcp.f32 %v462_v48  ;;  %v463_v55 = vadd.f32 1.0, %v1378_v50  ;;  %v324_v57 = vpop.f32.mrb[26].mxu0 }
 0x15d   :  { %v1110_v58 = vmul.f32 -1.442695, %v1819_v52  ;;  %v1823_v59 = vadd.f32 %v1766_v30, %v324_v57  ;;  %v1218_v51 = vpop.f32.mrb[27].mxu0  ;;  %1268 = vmatmul.mubr.bf16.gmra.mrb[8].mxu1 %v560_v54 }
 0x15e   :  { %v1380_v56 = vpop.eup %1379  ;;  %1389 = vrcp.f32 %v463_v55  ;;  %1271 = vmatprep.mubr.msk.bf16.mxu1 %vm1631_vm0, %v1630_v0 }
 0x15f   :  { %1391 = vpow2.f32 %v1110_v58  ;;  %v1111_v60 = vmul.f32 -1.442695, %v1823_v59  ;;  %v538_v1 = vmul.f32 %v1380_v56, %v1787_v63 }
 0x160   :  { %v1382_v61 = vpop.eup %1381 }
 0x161   :  { %v1384_v62 = vpop.eup %1383  ;;  %v539_v2 = vmul.f32 %v1382_v61, %v1791_v5  ;;  %1393 = vpow2.f32 %v1111_v60 }
 0x162   :  { %v464_v3 = vadd.f32 1.0, %v1384_v62  ;;  %v329_v4 = vpop.f32.mrb[28].mxu0 }
 0x163   :  { %v1386_v6 = vpop.eup %1385  ;;  %v1831_v7 = vadd.f32 %v1766_v30, %v329_v4  ;;  %v1221_v8 = vpop.f32.mrb[29].mxu0  ;;  %v561_v9 = vpack.c.bf16 %v539_v2, %v538_v1 }
 0x164   :  { %1395 = vrcp.f32 %v464_v3  ;;  %v465_v10 = vadd.f32 1.0, %v1386_v6  ;;  %v332_v11 = vpop.f32.mrb[30].mxu0 }
 0x165   :  { %v1112_v12 = vmul.f32 -1.442695, %v1831_v7  ;;  %v1835_v13 = vadd.f32 %v1766_v30, %v332_v11  ;;  %v1222_v63 = vpop.f32.mrb[31].mxu0  ;;  %1272 = vmatmul.mubr.bf16.gmra.mrb[12].mxu1 %v561_v9 }
 0x166   :  { %v1388_v5 = vpop.eup %1387  ;;  %1397 = vrcp.f32 %v465_v10  ;;  %1275 = vmatprep.mubr.msk.bf16.mxu1 %vm1631_vm0, %v1630_v0 }
 0x167   :  { %1399 = vpow2.f32 %v1112_v12  ;;  %v1113_v14 = vmul.f32 -1.442695, %v1835_v13  ;;  %v540_v18 = vmul.f32 %v1388_v5, %v1795_v16 }
 0x168   :  { %v1390_v15 = vpop.eup %1389 }
 0x169   :  { %v1392_v17 = vpop.eup %1391  ;;  %v541_v19 = vmul.f32 %v1390_v15, %v1799_v22  ;;  %1401 = vpow2.f32 %v1113_v14 }
 0x16a   :  { %v466_v20 = vadd.f32 1.0, %v1392_v17  ;;  %v337_v21 = vpop.f32.mrb[32].mxu0 }
 0x16b   :  { %v1394_v23 = vpop.eup %1393  ;;  %v1843_v24 = vadd.f32 %v1766_v30, %v337_v21  ;;  %v1225_v25 = vpop.f32.mrb[33].mxu0  ;;  %v562_v26 = vpack.c.bf16 %v541_v19, %v540_v18 }
 0x16c   :  { %1403 = vrcp.f32 %v466_v20  ;;  %v467_v27 = vadd.f32 1.0, %v1394_v23  ;;  %v340_v28 = vpop.f32.mrb[34].mxu0 }
 0x16d   :  { %v1114_v29 = vmul.f32 -1.442695, %v1843_v24  ;;  %v1847_v31 = vadd.f32 %v1766_v30, %v340_v28  ;;  %v1226_v16 = vpop.f32.mrb[35].mxu0  ;;  %1276 = vmatmul.mubr.bf16.gmra.mrb[16].mxu1 %v562_v26 }
 0x16e   :  { %v1396_v22 = vpop.eup %1395  ;;  %1405 = vrcp.f32 %v467_v27  ;;  %1279 = vmatprep.mubr.msk.bf16.mxu1 %vm1631_vm0, %v1630_v0 }
 0x16f   :  { %1407 = vpow2.f32 %v1114_v29  ;;  %v1115_v32 = vmul.f32 -1.442695, %v1847_v31  ;;  %v542_v36 = vmul.f32 %v1396_v22, %v1807_v34 }
 0x170   :  { %v1398_v33 = vpop.eup %1397 }
 0x171   :  { %v1400_v35 = vpop.eup %1399  ;;  %v543_v37 = vmul.f32 %v1398_v33, %v1811_v41  ;;  %1409 = vpow2.f32 %v1115_v32 }
 0x172   :  { %v468_v38 = vadd.f32 1.0, %v1400_v35  ;;  %v345_v39 = vpop.f32.mrb[36].mxu0 }
 0x173   :  { %v1402_v40 = vpop.eup %1401  ;;  %v1855_v42 = vadd.f32 %v1766_v30, %v345_v39  ;;  %v1229_v43 = vpop.f32.mrb[37].mxu0  ;;  %v563_v44 = vpack.c.bf16 %v543_v37, %v542_v36 }
 0x174   :  { %1411 = vrcp.f32 %v468_v38  ;;  %v469_v45 = vadd.f32 1.0, %v1402_v40  ;;  %v348_v46 = vpop.f32.mrb[38].mxu0 }
 0x175   :  { %v1116_v47 = vmul.f32 -1.442695, %v1855_v42  ;;  %v1859_v48 = vadd.f32 %v1766_v30, %v348_v46  ;;  %v1230_v34 = vpop.f32.mrb[39].mxu0  ;;  %1280 = vmatmul.mubr.bf16.gmra.mrb[20].mxu1 %v563_v44 }
 0x176   :  { %v1404_v41 = vpop.eup %1403  ;;  %1413 = vrcp.f32 %v469_v45  ;;  %1283 = vmatprep.mubr.msk.bf16.mxu1 %vm1631_vm0, %v1630_v0 }
 0x177   :  { %1415 = vpow2.f32 %v1116_v47  ;;  %v1117_v49 = vmul.f32 -1.442695, %v1859_v48  ;;  %v544_v54 = vmul.f32 %v1404_v41, %v1819_v52 }
 0x178   :  { %v1406_v50 = vpop.eup %1405 }
 0x179   :  { %v1408_v53 = vpop.eup %1407  ;;  %v545_v55 = vmul.f32 %v1406_v50, %v1823_v59  ;;  %1417 = vpow2.f32 %v1117_v49 }
 0x17a   :  { %v470_v57 = vadd.f32 1.0, %v1408_v53  ;;  %v353_v58 = vpop.f32.mrb[40].mxu0 }
 0x17b   :  { %v1410_v51 = vpop.eup %1409  ;;  %v1867_v56 = vadd.f32 %v1766_v30, %v353_v58  ;;  %v1233_v60 = vpop.f32.mrb[41].mxu0  ;;  %v564_v61 = vpack.c.bf16 %v545_v55, %v544_v54 }
 0x17c   :  { %1419 = vrcp.f32 %v470_v57  ;;  %v471_v62 = vadd.f32 1.0, %v1410_v51  ;;  %v356_v1 = vpop.f32.mrb[42].mxu0 }
 0x17d   :  { %v1118_v2 = vmul.f32 -1.442695, %v1867_v56  ;;  %v1871_v3 = vadd.f32 %v1766_v30, %v356_v1  ;;  %v1234_v52 = vpop.f32.mrb[43].mxu0  ;;  %1284 = vmatmul.mubr.bf16.gmra.mrb[24].mxu1 %v564_v61 }
 0x17e   :  { %v1412_v59 = vpop.eup %1411  ;;  %1421 = vrcp.f32 %v471_v62  ;;  %1287 = vmatprep.mubr.msk.bf16.mxu1 %vm1631_vm0, %v1630_v0 }
 0x17f   :  { %1423 = vpow2.f32 %v1118_v2  ;;  %v1119_v4 = vmul.f32 -1.442695, %v1871_v3  ;;  %v546_v9 = vmul.f32 %v1412_v59, %v1831_v7  ;;  %v1905_v59 = vld [vmem:[%s2379_s4] ss:$0 sm:$0xff] }
 0x180   :  { %v1414_v6 = vpop.eup %1413 }
 0x181   :  { %v1416_v8 = vpop.eup %1415  ;;  %v547_v10 = vmul.f32 %v1414_v6, %v1835_v13  ;;  %1425 = vpow2.f32 %v1119_v4 }
 0x182   :  { %v472_v11 = vadd.f32 1.0, %v1416_v8  ;;  %v361_v12 = vpop.f32.mrb[44].mxu0 }
 0x183   :  { %v1418_v63 = vpop.eup %1417  ;;  %v1879_v5 = vadd.f32 %v1766_v30, %v361_v12  ;;  %v1237_v14 = vpop.f32.mrb[45].mxu0  ;;  %v565_v15 = vpack.c.bf16 %v547_v10, %v546_v9 }
 0x184   :  { %1427 = vrcp.f32 %v472_v11  ;;  %v473_v17 = vadd.f32 1.0, %v1418_v63  ;;  %v364_v18 = vpop.f32.mrb[46].mxu0 }
 0x185   :  { %v1120_v19 = vmul.f32 -1.442695, %v1879_v5  ;;  %v365_v20 = vadd.f32 %v1766_v30, %v364_v18  ;;  %v1238_v21 = vpop.f32.mrb[47].mxu0  ;;  %1288 = vmatmul.mubr.bf16.gmra.mrb[28].mxu1 %v565_v15 }
 0x186   :  { %v1420_v7 = vpop.eup %1419  ;;  %1429 = vrcp.f32 %v473_v17  ;;  %1291 = vmatprep.mubr.msk.bf16.mxu1 %vm1631_vm0, %v1630_v0 }
 0x187   :  { %1431 = vpow2.f32 %v1120_v19  ;;  %v1121_v13 = vmul.f32 -1.442695, %v365_v20  ;;  %v548_v26 = vmul.f32 %v1420_v7, %v1843_v24 }
 0x188   :  { %v1422_v23 = vpop.eup %1421 }
 0x189   :  { %v1424_v25 = vpop.eup %1423  ;;  %v549_v27 = vmul.f32 %v1422_v23, %v1847_v31  ;;  %1433 = vpow2.f32 %v1121_v13 }
 0x18a   :  { %v474_v28 = vadd.f32 1.0, %v1424_v25  ;;  %v369_v29 = vpop.f32.mrb[48].mxu0 }
 0x18b   :  { %v1426_v16 = vpop.eup %1425  ;;  %v370_v22 = vadd.f32 %v1766_v30, %v369_v29  ;;  %v1241_v32 = vpop.f32.mrb[49].mxu0  ;;  %v566_v33 = vpack.c.bf16 %v549_v27, %v548_v26 }
 0x18c   :  { %1435 = vrcp.f32 %v474_v28  ;;  %v475_v35 = vadd.f32 1.0, %v1426_v16  ;;  %v372_v36 = vpop.f32.mrb[50].mxu0 }
 0x18d   :  { %v1122_v37 = vmul.f32 -1.442695, %v370_v22  ;;  %v373_v38 = vadd.f32 %v1766_v30, %v372_v36  ;;  %v1242_v39 = vpop.f32.mrb[51].mxu0  ;;  %1292 = vmatmul.mubr.bf16.gmra.mrb[32].mxu1 %v566_v33 }
 0x18e   :  { %v1428_v40 = vpop.eup %1427  ;;  %1437 = vrcp.f32 %v475_v35  ;;  %1295 = vmatprep.mubr.msk.bf16.mxu1 %vm1631_vm0, %v1630_v0 }
 0x18f   :  { %1439 = vpow2.f32 %v1122_v37  ;;  %v1123_v24 = vmul.f32 -1.442695, %v373_v38  ;;  %v550_v44 = vmul.f32 %v1428_v40, %v1855_v42 }
 0x190   :  { %v1430_v31 = vpop.eup %1429 }
 0x191   :  { %v1432_v43 = vpop.eup %1431  ;;  %v551_v45 = vmul.f32 %v1430_v31, %v1859_v48  ;;  %1441 = vpow2.f32 %v1123_v24 }
 0x192   :  { %v476_v46 = vadd.f32 1.0, %v1432_v43 }
 0x193   :  { %v1434_v47 = vpop.eup %1433  ;;  %v567_v34 = vpack.c.bf16 %v551_v45, %v550_v44 }
 0x194   :  { %1443 = vrcp.f32 %v476_v46  ;;  %v477_v30 = vadd.f32 1.0, %v1434_v47 }
 0x195   :  { %1296 = vmatmul.mubr.bf16.gmra.mrb[36].mxu1 %v567_v34 }
 0x196   :  { %v1436_v41 = vpop.eup %1435  ;;  %1445 = vrcp.f32 %v477_v30  ;;  %1299 = vmatprep.mubr.msk.bf16.mxu1 %vm1631_vm0, %v1630_v0 }
 0x197   :  { %v552_v53 = vmul.f32 %v1436_v41, %v1867_v56 }
 0x198   :  { %v1438_v49 = vpop.eup %1437 }
 0x199   :  { %v1440_v50 = vpop.eup %1439  ;;  %v553_v42 = vmul.f32 %v1438_v49, %v1871_v3 }
 0x19a   :  { %v478_v54 = vadd.f32 1.0, %v1440_v50 }
 0x19b   :  { %v1442_v48 = vpop.eup %1441  ;;  %v568_v55 = vpack.c.bf16 %v553_v42, %v552_v53 }
 0x19c   :  { %1447 = vrcp.f32 %v478_v54  ;;  %v479_v57 = vadd.f32 1.0, %v1442_v48 }
 0x19d   :  { %1300 = vmatmul.mubr.bf16.gmra.mrb[40].mxu1 %v568_v55 }
 0x19e   :  { %v1444_v58 = vpop.eup %1443  ;;  %1449 = vrcp.f32 %v479_v57  ;;  %1303 = vmatprep.mubr.msk.bf16.mxu1 %vm1631_vm0, %v1630_v0 }
 0x19f   :  { %v554_v60 = vmul.f32 %v1444_v58, %v1879_v5 }
 0x1a0   :  { %v1446_v51 = vpop.eup %1445 }
 0x1a1   :  { %v555_v61 = vmul.f32 %v1446_v51, %v365_v20 }
 0x1a3   :  { %v569_v62 = vpack.c.bf16 %v555_v61, %v554_v60 }
 0x1a5   :  { %1304 = vmatmul.mubr.bf16.gmra.mrb[44].mxu1 %v569_v62 }
 0x1a6   :  { %v1448_v56 = vpop.eup %1447  ;;  %1307 = vmatprep.mubr.msk.bf16.mxu1 %vm1631_vm0, %v1630_v0 }
 0x1a7   :  { %v556_v2 = vmul.f32 %v1448_v56, %v370_v22 }
 0x1a8   :  { %v1450_v1 = vpop.eup %1449 }
 0x1a9   :  { %v557_v3 = vmul.f32 %v1450_v1, %v373_v38 }
 0x1ab   :  { %v570_v52 = vpack.c.bf16 %v557_v3, %v556_v2 }
 0x1ad   :  { %1308 = vmatmul.mubr.bf16.gmra.mrb[48].mxu1 %v570_v52 }
 0x220   :  { %v676_v4 = vpop.f32.mrb[0].mxu1 }
 0x221   :  { %v1908_v6 = vadd.f32 %v1905_v59, %v676_v4  ;;  %v1261_v8 = vpop.f32.mrb[1].mxu1 }
 0x222   :  { %v679_v9 = vpop.f32.mrb[2].mxu1 }
 0x223   :  { %1014 = vst.msk [vmem:[%s2380_s5] sm:$0xff] %vm1013_vm1, %v1908_v6  ;;  %v1916_v0 = vadd.f32 %v1905_v59, %v679_v9  ;;  %779 = vmax.xlane.f32.xlu0 %v1908_v6  ;;  %v1262_v10 = vpop.f32.mrb[3].mxu1 }
 0x225   :  { %1015 = vst.msk [vmem:[%s2380_s5 + $0x8] sm:$0xff] %vm1013_vm1, %v1916_v0 }
 0x227   :  { %781 = vmax.xlane.f32.xlu0 %v1916_v0 }
 0x228   :  { %v684_v11 = vpop.f32.mrb[4].mxu1 }
 0x229   :  { %v1926_v12 = vadd.f32 %v1905_v59, %v684_v11  ;;  %v1265_v63 = vpop.f32.mrb[5].mxu1 }
 0x22a   :  { %v687_v5 = vpop.f32.mrb[6].mxu1 }
 0x22b   :  { %1016 = vst.msk [vmem:[%s2380_s5 + $0x10] sm:$0xff] %vm1013_vm1, %v1926_v12  ;;  %v1934_v14 = vadd.f32 %v1905_v59, %v687_v5  ;;  %783 = vmax.xlane.f32.xlu1 %v1926_v12  ;;  %v1266_v15 = vpop.f32.mrb[7].mxu1 }
 0x22d   :  { %1017 = vst.msk [vmem:[%s2380_s5 + $0x18] sm:$0xff] %vm1013_vm1, %v1934_v14 }
 0x22f   :  { %785 = vmax.xlane.f32.xlu1 %v1934_v14 }
 0x230   :  { %v692_v17 = vpop.f32.mrb[8].mxu1 }
 0x231   :  { %v1944_v18 = vadd.f32 %v1905_v59, %v692_v17  ;;  %v1269_v19 = vpop.f32.mrb[9].mxu1 }
 0x232   :  { %v695_v20 = vpop.f32.mrb[10].mxu1 }
 0x233   :  { %1018 = vst.msk [vmem:[%s2380_s5 + $0x20] sm:$0xff] %vm1013_vm1, %v1944_v18  ;;  %v1952_v21 = vadd.f32 %v1905_v59, %v695_v20  ;;  %787 = vmax.xlane.f32.xlu0 %v1944_v18  ;;  %v1270_v7 = vpop.f32.mrb[11].mxu1 }
 0x235   :  { %1019 = vst.msk [vmem:[%s2380_s5 + $0x28] sm:$0xff] %vm1013_vm1, %v1952_v21  ;;  %789 = vmax.xlane.f32.xlu1 %v1952_v21 }
 0x238   :  { %v700_v13 = vpop.f32.mrb[12].mxu1 }
 0x239   :  { %v1962_v23 = vadd.f32 %v1905_v59, %v700_v13  ;;  %v1273_v25 = vpop.f32.mrb[13].mxu1 }
 0x23a   :  { %v703_v26 = vpop.f32.mrb[14].mxu1 }
 0x23b   :  { %1020 = vst.msk [vmem:[%s2380_s5 + $0x30] sm:$0xff] %vm1013_vm1, %v1962_v23  ;;  %v1970_v27 = vadd.f32 %v1905_v59, %v703_v26  ;;  %791 = vmax.xlane.f32.xlu0 %v1962_v23  ;;  %v1274_v28 = vpop.f32.mrb[15].mxu1 }
 0x23d   :  { %1021 = vst.msk [vmem:[%s2380_s5 + $0x38] sm:$0xff] %vm1013_vm1, %v1970_v27  ;;  %793 = vmax.xlane.f32.xlu1 %v1970_v27 }
 0x240   :  { %v708_v29 = vpop.f32.mrb[16].mxu1 }
 0x241   :  { %v1980_v16 = vadd.f32 %v1905_v59, %v708_v29  ;;  %v1277_v22 = vpop.f32.mrb[17].mxu1 }
 0x242   :  { %v711_v32 = vpop.f32.mrb[18].mxu1 }
 0x243   :  { %1022 = vst.msk [vmem:[%s2380_s5 + $0x40] sm:$0xff] %vm1013_vm1, %v1980_v16  ;;  %v1988_v33 = vadd.f32 %v1905_v59, %v711_v32  ;;  %795 = vmax.xlane.f32.xlu0 %v1980_v16  ;;  %v1278_v35 = vpop.f32.mrb[19].mxu1 }
 0x245   :  { %1023 = vst.msk [vmem:[%s2380_s5 + $0x48] sm:$0xff] %vm1013_vm1, %v1988_v33  ;;  %797 = vmax.xlane.f32.xlu1 %v1988_v33 }
 0x248   :  { %v716_v36 = vpop.f32.mrb[20].mxu1 }
 0x249   :  { %v1998_v37 = vadd.f32 %v1905_v59, %v716_v36  ;;  %v1281_v38 = vpop.f32.mrb[21].mxu1 }
 0x24a   :  { %v719_v39 = vpop.f32.mrb[22].mxu1 }
 0x24b   :  { %1024 = vst.msk [vmem:[%s2380_s5 + $0x50] sm:$0xff] %vm1013_vm1, %v1998_v37  ;;  %v2006_v40 = vadd.f32 %v1905_v59, %v719_v39  ;;  %799 = vmax.xlane.f32.xlu0 %v1998_v37  ;;  %v1282_v24 = vpop.f32.mrb[23].mxu1 }
 0x24d   :  { %1025 = vst.msk [vmem:[%s2380_s5 + $0x58] sm:$0xff] %vm1013_vm1, %v2006_v40  ;;  %801 = vmax.xlane.f32.xlu1 %v2006_v40 }
 0x250   :  { %v724_v31 = vpop.f32.mrb[24].mxu1 }
 0x251   :  { %v2016_v43 = vadd.f32 %v1905_v59, %v724_v31  ;;  %v1285_v44 = vpop.f32.mrb[25].mxu1 }
 0x252   :  { %v727_v45 = vpop.f32.mrb[26].mxu1 }
 0x253   :  { %1026 = vst.msk [vmem:[%s2380_s5 + $0x60] sm:$0xff] %vm1013_vm1, %v2016_v43  ;;  %v2024_v46 = vadd.f32 %v1905_v59, %v727_v45  ;;  %803 = vmax.xlane.f32.xlu0 %v2016_v43  ;;  %v1286_v47 = vpop.f32.mrb[27].mxu1 }
 0x255   :  { %1027 = vst.msk [vmem:[%s2380_s5 + $0x68] sm:$0xff] %vm1013_vm1, %v2024_v46  ;;  %805 = vmax.xlane.f32.xlu1 %v2024_v46 }
 0x258   :  { %v732_v34 = vpop.f32.mrb[28].mxu1 }
 0x259   :  { %v2034_v30 = vadd.f32 %v1905_v59, %v732_v34  ;;  %v1289_v41 = vpop.f32.mrb[29].mxu1 }
 0x25a   :  { %v735_v49 = vpop.f32.mrb[30].mxu1 }
 0x25b   :  { %1028 = vst.msk [vmem:[%s2380_s5 + $0x70] sm:$0xff] %vm1013_vm1, %v2034_v30  ;;  %v2042_v50 = vadd.f32 %v1905_v59, %v735_v49  ;;  %807 = vmax.xlane.f32.xlu0 %v2034_v30  ;;  %v1290_v53 = vpop.f32.mrb[31].mxu1 }
 0x25d   :  { %1029 = vst.msk [vmem:[%s2380_s5 + $0x78] sm:$0xff] %vm1013_vm1, %v2042_v50  ;;  %809 = vmax.xlane.f32.xlu1 %v2042_v50 }
 0x260   :  { %v740_v42 = vpop.f32.mrb[32].mxu1 }
 0x261   :  { %v2052_v54 = vadd.f32 %v1905_v59, %v740_v42  ;;  %v1293_v48 = vpop.f32.mrb[33].mxu1 }
 0x262   :  { %v743_v55 = vpop.f32.mrb[34].mxu1 }
 0x263   :  { %1030 = vst.msk [vmem:[%s2380_s5 + $0x80] sm:$0xff] %vm1013_vm1, %v2052_v54  ;;  %v2060_v57 = vadd.f32 %v1905_v59, %v743_v55  ;;  %811 = vmax.xlane.f32.xlu0 %v2052_v54  ;;  %v1294_v58 = vpop.f32.mrb[35].mxu1 }
 0x265   :  { %1031 = vst.msk [vmem:[%s2380_s5 + $0x88] sm:$0xff] %vm1013_vm1, %v2060_v57  ;;  %813 = vmax.xlane.f32.xlu1 %v2060_v57 }
 0x268   :  { %v748_v51 = vpop.f32.mrb[36].mxu1 }
 0x269   :  { %v2070_v60 = vadd.f32 %v1905_v59, %v748_v51  ;;  %v1297_v61 = vpop.f32.mrb[37].mxu1 }
 0x26a   :  { %v751_v62 = vpop.f32.mrb[38].mxu1 }
 0x26b   :  { %1032 = vst.msk [vmem:[%s2380_s5 + $0x90] sm:$0xff] %vm1013_vm1, %v2070_v60  ;;  %v2078_v56 = vadd.f32 %v1905_v59, %v751_v62  ;;  %815 = vmax.xlane.f32.xlu0 %v2070_v60  ;;  %v1298_v1 = vpop.f32.mrb[39].mxu1 }
 0x26d   :  { %1033 = vst.msk [vmem:[%s2380_s5 + $0x98] sm:$0xff] %vm1013_vm1, %v2078_v56  ;;  %817 = vmax.xlane.f32.xlu1 %v2078_v56 }
 0x270   :  { %v756_v2 = vpop.f32.mrb[40].mxu1 }
 0x271   :  { %v2088_v3 = vadd.f32 %v1905_v59, %v756_v2  ;;  %v1301_v52 = vpop.f32.mrb[41].mxu1 }
 0x272   :  { %v759_v4 = vpop.f32.mrb[42].mxu1 }
 0x273   :  { %1034 = vst.msk [vmem:[%s2380_s5 + $0xa0] sm:$0xff] %vm1013_vm1, %v2088_v3  ;;  %v2096_v8 = vadd.f32 %v1905_v59, %v759_v4  ;;  %819 = vmax.xlane.f32.xlu0 %v2088_v3  ;;  %v1302_v9 = vpop.f32.mrb[43].mxu1 }
 0x275   :  { %1035 = vst.msk [vmem:[%s2380_s5 + $0xa8] sm:$0xff] %vm1013_vm1, %v2096_v8  ;;  %821 = vmax.xlane.f32.xlu1 %v2096_v8 }
 0x278   :  { %v764_v10 = vpop.f32.mrb[44].mxu1 }
 0x279   :  { %v2106_v11 = vadd.f32 %v1905_v59, %v764_v10  ;;  %v1305_v63 = vpop.f32.mrb[45].mxu1 }
 0x27a   :  { %v767_v5 = vpop.f32.mrb[46].mxu1 }
 0x27b   :  { %1036 = vst.msk [vmem:[%s2380_s5 + $0xb0] sm:$0xff] %vm1013_vm1, %v2106_v11  ;;  %v2114_v15 = vadd.f32 %v1905_v59, %v767_v5  ;;  %823 = vmax.xlane.f32.xlu0 %v2106_v11  ;;  %v1306_v17 = vpop.f32.mrb[47].mxu1 }
 0x27d   :  { %1037 = vst.msk [vmem:[%s2380_s5 + $0xb8] sm:$0xff] %vm1013_vm1, %v2114_v15  ;;  %825 = vmax.xlane.f32.xlu1 %v2114_v15 }
 0x280   :  { %v772_v19 = vpop.f32.mrb[48].mxu1 }
 0x281   :  { %v2124_v20 = vadd.f32 %v1905_v59, %v772_v19  ;;  %v1309_v7 = vpop.f32.mrb[49].mxu1 }
 0x282   :  { %v775_v13 = vpop.f32.mrb[50].mxu1 }
 0x283   :  { %1038 = vst.msk [vmem:[%s2380_s5 + $0xc0] sm:$0xff] %vm1013_vm1, %v2124_v20  ;;  %v2132_v25 = vadd.f32 %v1905_v59, %v775_v13  ;;  %827 = vmax.xlane.f32.xlu0 %v2124_v20  ;;  %v1310_v26 = vpop.f32.mrb[51].mxu1 }
 0x285   :  { %1039 = vst.msk [vmem:[%s2380_s5 + $0xc8] sm:$0xff] %vm1013_vm1, %v2132_v25  ;;  %829 = vmax.xlane.f32.xlu1 %v2132_v25 }
 0x2b0   :  { %v780_v28 = vpop.xlane.xlu0 %779 }
 0x2b1   :  { %v831_v29 = vsub.f32 %v1908_v6, %v780_v28 }
 0x2b3   :  { %v857_v22 = vmul.f32 1.442695, %v831_v29 }
 0x2b4   :  { %v782_v32 = vpop.xlane.xlu0 %781 }
 0x2b5   :  { %1451 = vpow2.f32 %v857_v22  ;;  %v832_v59 = vsub.f32 %v1916_v0, %v782_v32 }
 0x2b7   :  { %v859_v35 = vmul.f32 1.442695, %v832_v59 }
 0x2b8   :  { %v784_v36 = vpop.xlane.xlu1 %783 }
 0x2b9   :  { %1453 = vpow2.f32 %v859_v35  ;;  %v833_v38 = vsub.f32 %v1926_v12, %v784_v36 }
 0x2bb   :  { %v861_v39 = vmul.f32 1.442695, %v833_v38 }
 0x2bc   :  { %v786_v24 = vpop.xlane.xlu1 %785 }
 0x2bd   :  { %1455 = vpow2.f32 %v861_v39  ;;  %v834_v31 = vsub.f32 %v1934_v14, %v786_v24 }
 0x2bf   :  { %v2145_v44 = vpop.eup %1451  ;;  %v863_v45 = vmul.f32 1.442695, %v834_v31 }
 0x2c0   :  { %v788_v47 = vpop.xlane.xlu0 %787  ;;  %909 = vadd.xlane.f32.xlu0 %v2145_v44 }
 0x2c1   :  { %1457 = vpow2.f32 %v863_v45  ;;  %v835_v6 = vsub.f32 %v1944_v18, %v788_v47 }
 0x2c2   :  { %v790_v0 = vpop.xlane.xlu1 %789 }
 0x2c3   :  { %v2149_v34 = vpop.eup %1453  ;;  %v865_v41 = vmul.f32 1.442695, %v835_v6  ;;  %v836_v12 = vsub.f32 %v1952_v21, %v790_v0 }
 0x2c4   :  { %911 = vadd.xlane.f32.xlu1 %v2149_v34 }
 0x2c5   :  { %1459 = vpow2.f32 %v865_v41  ;;  %v867_v49 = vmul.f32 1.442695, %v836_v12 }
 0x2c7   :  { %v2153_v14 = vpop.eup %1455  ;;  %1461 = vpow2.f32 %v867_v49 }
 0x2c8   :  { %v792_v53 = vpop.xlane.xlu0 %791  ;;  %913 = vadd.xlane.f32.xlu0 %v2153_v14 }
 0x2c9   :  { %v837_v42 = vsub.f32 %v1962_v23, %v792_v53 }
 0x2ca   :  { %v794_v48 = vpop.xlane.xlu1 %793 }
 0x2cb   :  { %v2157_v18 = vpop.eup %1457  ;;  %v869_v55 = vmul.f32 1.442695, %v837_v42  ;;  %v838_v58 = vsub.f32 %v1970_v27, %v794_v48 }
 0x2cc   :  { %915 = vadd.xlane.f32.xlu1 %v2157_v18 }
 0x2cd   :  { %1463 = vpow2.f32 %v869_v55  ;;  %v871_v21 = vmul.f32 1.442695, %v838_v58 }
 0x2cf   :  { %v2161_v51 = vpop.eup %1459  ;;  %1465 = vpow2.f32 %v871_v21 }
 0x2d0   :  { %v796_v61 = vpop.xlane.xlu0 %795  ;;  %917 = vadd.xlane.f32.xlu0 %v2161_v51 }
 0x2d1   :  { %v2164_v62 = vpop.eup %1461  ;;  %v839_v23 = vsub.f32 %v1980_v16, %v796_v61 }
 0x2d2   :  { %v798_v1 = vpop.xlane.xlu1 %797  ;;  %919 = vadd.xlane.f32.xlu1 %v2164_v62 }
 0x2d3   :  { %v873_v2 = vmul.f32 1.442695, %v839_v23  ;;  %v840_v27 = vsub.f32 %v1988_v33, %v798_v1 }
 0x2d5   :  { %1467 = vpow2.f32 %v873_v2  ;;  %v875_v52 = vmul.f32 1.442695, %v840_v27 }
 0x2d7   :  { %v2169_v4 = vpop.eup %1463  ;;  %1469 = vpow2.f32 %v875_v52 }
 0x2d8   :  { %v800_v9 = vpop.xlane.xlu0 %799  ;;  %921 = vadd.xlane.f32.xlu0 %v2169_v4 }
 0x2d9   :  { %v2172_v10 = vpop.eup %1465  ;;  %v841_v63 = vsub.f32 %v1998_v37, %v800_v9 }
 0x2da   :  { %v802_v5 = vpop.xlane.xlu1 %801  ;;  %923 = vadd.xlane.f32.xlu1 %v2172_v10 }
 0x2db   :  { %v877_v16 = vmul.f32 1.442695, %v841_v63  ;;  %v842_v17 = vsub.f32 %v2006_v40, %v802_v5 }
 0x2dd   :  { %1471 = vpow2.f32 %v877_v16  ;;  %v879_v33 = vmul.f32 1.442695, %v842_v17 }
 0x2df   :  { %v2177_v19 = vpop.eup %1467  ;;  %1473 = vpow2.f32 %v879_v33 }
 0x2e0   :  { %v804_v7 = vpop.xlane.xlu0 %803  ;;  %925 = vadd.xlane.f32.xlu0 %v2177_v19 }
 0x2e1   :  { %v2180_v13 = vpop.eup %1469  ;;  %v843_v26 = vsub.f32 %v2016_v43, %v804_v7 }
 0x2e2   :  { %v806_v28 = vpop.xlane.xlu1 %805  ;;  %927 = vadd.xlane.f32.xlu1 %v2180_v13 }
 0x2e3   :  { %v881_v37 = vmul.f32 1.442695, %v843_v26  ;;  %v844_v29 = vsub.f32 %v2024_v46, %v806_v28 }
 0x2e5   :  { %1475 = vpow2.f32 %v881_v37  ;;  %v883_v40 = vmul.f32 1.442695, %v844_v29 }
 0x2e7   :  { %v2185_v22 = vpop.eup %1471  ;;  %1477 = vpow2.f32 %v883_v40 }
 0x2e8   :  { %v808_v32 = vpop.xlane.xlu0 %807  ;;  %929 = vadd.xlane.f32.xlu0 %v2185_v22 }
 0x2e9   :  { %v2188_v59 = vpop.eup %1473  ;;  %v845_v35 = vsub.f32 %v2034_v30, %v808_v32 }
 0x2ea   :  { %v810_v36 = vpop.xlane.xlu1 %809  ;;  %931 = vadd.xlane.f32.xlu1 %v2188_v59 }
 0x2eb   :  { %v885_v43 = vmul.f32 1.442695, %v845_v35  ;;  %v846_v38 = vsub.f32 %v2042_v50, %v810_v36 }
 0x2ed   :  { %1479 = vpow2.f32 %v885_v43  ;;  %v887_v46 = vmul.f32 1.442695, %v846_v38 }
 0x2ef   :  { %v2193_v39 = vpop.eup %1475  ;;  %1481 = vpow2.f32 %v887_v46 }
 0x2f0   :  { %v812_v24 = vpop.xlane.xlu0 %811  ;;  %933 = vadd.xlane.f32.xlu0 %v2193_v39 }
 0x2f1   :  { %v2196_v31 = vpop.eup %1477  ;;  %v847_v45 = vsub.f32 %v2052_v54, %v812_v24 }
 0x2f2   :  { %v814_v47 = vpop.xlane.xlu1 %813  ;;  %935 = vadd.xlane.f32.xlu1 %v2196_v31 }
 0x2f3   :  { %v889_v30 = vmul.f32 1.442695, %v847_v45  ;;  %v848_v6 = vsub.f32 %v2060_v57, %v814_v47 }
 0x2f5   :  { %1483 = vpow2.f32 %v889_v30  ;;  %v891_v50 = vmul.f32 1.442695, %v848_v6 }
 0x2f7   :  { %v2201_v0 = vpop.eup %1479  ;;  %1485 = vpow2.f32 %v891_v50 }
 0x2f8   :  { %v816_v41 = vpop.xlane.xlu0 %815  ;;  %937 = vadd.xlane.f32.xlu0 %v2201_v0 }
 0x2f9   :  { %v2204_v12 = vpop.eup %1481  ;;  %v849_v49 = vsub.f32 %v2070_v60, %v816_v41 }
 0x2fa   :  { %v818_v53 = vpop.xlane.xlu1 %817  ;;  %939 = vadd.xlane.f32.xlu1 %v2204_v12 }
 0x2fb   :  { %v893_v54 = vmul.f32 1.442695, %v849_v49  ;;  %v850_v42 = vsub.f32 %v2078_v56, %v818_v53 }
 0x2fd   :  { %1487 = vpow2.f32 %v893_v54  ;;  %v895_v57 = vmul.f32 1.442695, %v850_v42 }
 0x2ff   :  { %v2209_v48 = vpop.eup %1483  ;;  %1489 = vpow2.f32 %v895_v57 }
 0x300   :  { %v820_v55 = vpop.xlane.xlu0 %819  ;;  %941 = vadd.xlane.f32.xlu0 %v2209_v48 }
 0x301   :  { %v2212_v58 = vpop.eup %1485  ;;  %v851_v21 = vsub.f32 %v2088_v3, %v820_v55 }
 0x302   :  { %v822_v61 = vpop.xlane.xlu1 %821  ;;  %943 = vadd.xlane.f32.xlu1 %v2212_v58 }
 0x303   :  { %v897_v60 = vmul.f32 1.442695, %v851_v21  ;;  %v852_v23 = vsub.f32 %v2096_v8, %v822_v61 }
 0x305   :  { %1491 = vpow2.f32 %v897_v60  ;;  %v899_v56 = vmul.f32 1.442695, %v852_v23 }
 0x307   :  { %v2217_v1 = vpop.eup %1487  ;;  %1493 = vpow2.f32 %v899_v56 }
 0x308   :  { %v824_v2 = vpop.xlane.xlu0 %823  ;;  %945 = vadd.xlane.f32.xlu0 %v2217_v1 }
 0x309   :  { %v2220_v27 = vpop.eup %1489  ;;  %v853_v52 = vsub.f32 %v2106_v11, %v824_v2 }
 0x30a   :  { %v826_v9 = vpop.xlane.xlu1 %825  ;;  %947 = vadd.xlane.f32.xlu1 %v2220_v27 }
 0x30b   :  { %v901_v3 = vmul.f32 1.442695, %v853_v52  ;;  %v854_v63 = vsub.f32 %v2114_v15, %v826_v9 }
 0x30d   :  { %1495 = vpow2.f32 %v901_v3  ;;  %v903_v8 = vmul.f32 1.442695, %v854_v63 }
 0x30f   :  { %v2225_v5 = vpop.eup %1491  ;;  %1497 = vpow2.f32 %v903_v8 }
 0x310   :  { %949 = vadd.xlane.f32.xlu0 %v2225_v5  ;;  %v828_v16 = vpop.xlane.xlu0 %827 }
 0x311   :  { %v2228_v17 = vpop.eup %1493  ;;  %v855_v33 = vsub.f32 %v2124_v20, %v828_v16 }
 0x312   :  { %951 = vadd.xlane.f32.xlu1 %v2228_v17  ;;  %v830_v11 = vpop.xlane.xlu1 %829 }
 0x313   :  { %v905_v7 = vmul.f32 1.442695, %v855_v33  ;;  %v856_v26 = vsub.f32 %v2132_v25, %v830_v11 }
 0x315   :  { %1499 = vpow2.f32 %v905_v7  ;;  %v907_v15 = vmul.f32 1.442695, %v856_v26 }
 0x317   :  { %v2233_v28 = vpop.eup %1495  ;;  %1501 = vpow2.f32 %v907_v15 }
 0x318   :  { %953 = vadd.xlane.f32.xlu0 %v2233_v28 }
 0x319   :  { %v2236_v37 = vpop.eup %1497 }
 0x31a   :  { %955 = vadd.xlane.f32.xlu1 %v2236_v37 }
 0x31f   :  { %v2239_v29 = vpop.eup %1499 }
 0x320   :  { %957 = vadd.xlane.f32.xlu0 %v2239_v29 }
 0x321   :  { %v2242_v20 = vpop.eup %1501 }
 0x322   :  { %959 = vadd.xlane.f32.xlu1 %v2242_v20 }
 0x34d   :  { %v910_v25 = vpop.xlane.xlu0 %909 }
 0x34e   :  { %1503 = vrcp.f32 %v910_v25 }
 0x351   :  { %v912_v40 = vpop.xlane.xlu1 %911 }
 0x352   :  { %1505 = vrcp.f32 %v912_v40 }
 0x355   :  { %v914_v32 = vpop.xlane.xlu0 %913 }
 0x356   :  { %1507 = vrcp.f32 %v914_v32 }
 0x358   :  { %v1504_v35 = vpop.eup %1503 }
 0x359   :  { %v962_v36 = vmul.f32 %v1504_v35, %v2145_v44  ;;  %v916_v43 = vpop.xlane.xlu1 %915 }
 0x35a   :  { %1509 = vrcp.f32 %v916_v43 }
 0x35b   :  { %1040 = vst.msk [vmem:[%s2381_s6] sm:$0xff] %vm1013_vm1, %v962_v36 }
 0x35c   :  { %v1506_v38 = vpop.eup %1505 }
 0x35d   :  { %v964_v46 = vmul.f32 %v1506_v38, %v2149_v34  ;;  %v918_v24 = vpop.xlane.xlu0 %917 }
 0x35e   :  { %1511 = vrcp.f32 %v918_v24 }
 0x35f   :  { %1041 = vst.msk [vmem:[%s2381_s6 + $0x8] sm:$0xff] %vm1013_vm1, %v964_v46  ;;  %v920_v45 = vpop.xlane.xlu1 %919 }
 0x360   :  { %v1508_v47 = vpop.eup %1507  ;;  %1513 = vrcp.f32 %v920_v45 }
 0x361   :  { %v966_v44 = vmul.f32 %v1508_v47, %v2153_v14 }
 0x363   :  { %1042 = vst.msk [vmem:[%s2381_s6 + $0x10] sm:$0xff] %vm1013_vm1, %v966_v44 }
 0x364   :  { %v1510_v30 = vpop.eup %1509 }
 0x365   :  { %v968_v34 = vmul.f32 %v1510_v30, %v2157_v18  ;;  %v922_v6 = vpop.xlane.xlu0 %921 }
 0x366   :  { %1515 = vrcp.f32 %v922_v6 }
 0x367   :  { %1043 = vst.msk [vmem:[%s2381_s6 + $0x18] sm:$0xff] %vm1013_vm1, %v968_v34  ;;  %v924_v50 = vpop.xlane.xlu1 %923 }
 0x368   :  { %v1512_v41 = vpop.eup %1511  ;;  %1517 = vrcp.f32 %v924_v50 }
 0x369   :  { %v970_v14 = vmul.f32 %v1512_v41, %v2161_v51 }
 0x36a   :  { %v1514_v49 = vpop.eup %1513 }
 0x36b   :  { %1044 = vst.msk [vmem:[%s2381_s6 + $0x20] sm:$0xff] %vm1013_vm1, %v970_v14  ;;  %v972_v18 = vmul.f32 %v1514_v49, %v2164_v62 }
 0x36d   :  { %1045 = vst.msk [vmem:[%s2381_s6 + $0x28] sm:$0xff] %vm1013_vm1, %v972_v18  ;;  %v926_v53 = vpop.xlane.xlu0 %925 }
 0x36e   :  { %1519 = vrcp.f32 %v926_v53 }
 0x36f   :  { %v928_v54 = vpop.xlane.xlu1 %927 }
 0x370   :  { %v1516_v42 = vpop.eup %1515  ;;  %1521 = vrcp.f32 %v928_v54 }
 0x371   :  { %v974_v51 = vmul.f32 %v1516_v42, %v2169_v4 }
 0x372   :  { %v1518_v57 = vpop.eup %1517 }
 0x373   :  { %1046 = vst.msk [vmem:[%s2381_s6 + $0x30] sm:$0xff] %vm1013_vm1, %v974_v51  ;;  %v976_v62 = vmul.f32 %v1518_v57, %v2172_v10 }
 0x375   :  { %1047 = vst.msk [vmem:[%s2381_s6 + $0x38] sm:$0xff] %vm1013_vm1, %v976_v62  ;;  %v930_v55 = vpop.xlane.xlu0 %929 }
 0x376   :  { %1523 = vrcp.f32 %v930_v55 }
 0x377   :  { %v932_v21 = vpop.xlane.xlu1 %931 }
 0x378   :  { %v1520_v61 = vpop.eup %1519  ;;  %1525 = vrcp.f32 %v932_v21 }
 0x379   :  { %v978_v4 = vmul.f32 %v1520_v61, %v2177_v19 }
 0x37a   :  { %v1522_v60 = vpop.eup %1521 }
 0x37b   :  { %1048 = vst.msk [vmem:[%s2381_s6 + $0x40] sm:$0xff] %vm1013_vm1, %v978_v4  ;;  %v980_v10 = vmul.f32 %v1522_v60, %v2180_v13 }
 0x37d   :  { %1049 = vst.msk [vmem:[%s2381_s6 + $0x48] sm:$0xff] %vm1013_vm1, %v980_v10  ;;  %v934_v23 = vpop.xlane.xlu0 %933 }
 0x37e   :  { %1527 = vrcp.f32 %v934_v23 }
 0x37f   :  { %v936_v56 = vpop.xlane.xlu1 %935 }
 0x380   :  { %v1524_v2 = vpop.eup %1523  ;;  %1529 = vrcp.f32 %v936_v56 }
 0x381   :  { %v982_v19 = vmul.f32 %v1524_v2, %v2185_v22 }
 0x382   :  { %v1526_v52 = vpop.eup %1525 }
 0x383   :  { %1050 = vst.msk [vmem:[%s2381_s6 + $0x50] sm:$0xff] %vm1013_vm1, %v982_v19  ;;  %v984_v13 = vmul.f32 %v1526_v52, %v2188_v59 }
 0x385   :  { %1051 = vst.msk [vmem:[%s2381_s6 + $0x58] sm:$0xff] %vm1013_vm1, %v984_v13  ;;  %v938_v9 = vpop.xlane.xlu0 %937 }
 0x386   :  { %1531 = vrcp.f32 %v938_v9 }
 0x387   :  { %v940_v3 = vpop.xlane.xlu1 %939 }
 0x388   :  { %v1528_v63 = vpop.eup %1527  ;;  %1533 = vrcp.f32 %v940_v3 }
 0x389   :  { %v986_v22 = vmul.f32 %v1528_v63, %v2193_v39 }
 0x38a   :  { %v1530_v8 = vpop.eup %1529 }
 0x38b   :  { %1052 = vst.msk [vmem:[%s2381_s6 + $0x60] sm:$0xff] %vm1013_vm1, %v986_v22  ;;  %v988_v59 = vmul.f32 %v1530_v8, %v2196_v31 }
 0x38d   :  { %1053 = vst.msk [vmem:[%s2381_s6 + $0x68] sm:$0xff] %vm1013_vm1, %v988_v59  ;;  %v942_v16 = vpop.xlane.xlu0 %941 }
 0x38e   :  { %1535 = vrcp.f32 %v942_v16 }
 0x38f   :  { %v944_v33 = vpop.xlane.xlu1 %943 }
 0x390   :  { %v1532_v11 = vpop.eup %1531  ;;  %1537 = vrcp.f32 %v944_v33 }
 0x391   :  { %v990_v39 = vmul.f32 %v1532_v11, %v2201_v0 }
 0x392   :  { %v1534_v7 = vpop.eup %1533 }
 0x393   :  { %1054 = vst.msk [vmem:[%s2381_s6 + $0x70] sm:$0xff] %vm1013_vm1, %v990_v39  ;;  %v992_v31 = vmul.f32 %v1534_v7, %v2204_v12 }
 0x395   :  { %1055 = vst.msk [vmem:[%s2381_s6 + $0x78] sm:$0xff] %vm1013_vm1, %v992_v31  ;;  %v946_v26 = vpop.xlane.xlu0 %945 }
 0x396   :  { %1539 = vrcp.f32 %v946_v26 }
 0x397   :  { %v948_v15 = vpop.xlane.xlu1 %947 }
 0x398   :  { %v1536_v25 = vpop.eup %1535  ;;  %1541 = vrcp.f32 %v948_v15 }
 0x399   :  { %v994_v0 = vmul.f32 %v1536_v25, %v2209_v48 }
 0x39a   :  { %v1538_v40 = vpop.eup %1537 }
 0x39b   :  { %1056 = vst.msk [vmem:[%s2381_s6 + $0x80] sm:$0xff] %vm1013_vm1, %v994_v0  ;;  %v996_v12 = vmul.f32 %v1538_v40, %v2212_v58 }
 0x39d   :  { %1057 = vst.msk [vmem:[%s2381_s6 + $0x88] sm:$0xff] %vm1013_vm1, %v996_v12  ;;  %v950_v32 = vpop.xlane.xlu0 %949 }
 0x39e   :  { %1543 = vrcp.f32 %v950_v32 }
 0x39f   :  { %v952_v35 = vpop.xlane.xlu1 %951 }
 0x3a0   :  { %v1540_v36 = vpop.eup %1539  ;;  %1545 = vrcp.f32 %v952_v35 }
 0x3a1   :  { %v998_v48 = vmul.f32 %v1540_v36, %v2217_v1 }
 0x3a2   :  { %v1542_v43 = vpop.eup %1541 }
 0x3a3   :  { %1058 = vst.msk [vmem:[%s2381_s6 + $0x90] sm:$0xff] %vm1013_vm1, %v998_v48  ;;  %v1000_v58 = vmul.f32 %v1542_v43, %v2220_v27 }
 0x3a5   :  { %1059 = vst.msk [vmem:[%s2381_s6 + $0x98] sm:$0xff] %vm1013_vm1, %v1000_v58  ;;  %v954_v38 = vpop.xlane.xlu0 %953 }
 0x3a6   :  { %1547 = vrcp.f32 %v954_v38 }
 0x3a7   :  { %v956_v46 = vpop.xlane.xlu1 %955 }
 0x3a8   :  { %v1544_v24 = vpop.eup %1543  ;;  %1549 = vrcp.f32 %v956_v46 }
 0x3a9   :  { %v1002_v1 = vmul.f32 %v1544_v24, %v2225_v5 }
 0x3aa   :  { %v1546_v45 = vpop.eup %1545 }
 0x3ab   :  { %1060 = vst.msk [vmem:[%s2381_s6 + $0xa0] sm:$0xff] %vm1013_vm1, %v1002_v1  ;;  %v1004_v27 = vmul.f32 %v1546_v45, %v2228_v17 }
 0x3ad   :  { %1061 = vst.msk [vmem:[%s2381_s6 + $0xa8] sm:$0xff] %vm1013_vm1, %v1004_v27  ;;  %v958_v47 = vpop.xlane.xlu0 %957 }
 0x3ae   :  { %1551 = vrcp.f32 %v958_v47 }
 0x3af   :  { %v960_v44 = vpop.xlane.xlu1 %959 }
 0x3b0   :  { %v1548_v30 = vpop.eup %1547  ;;  %1553 = vrcp.f32 %v960_v44 }
 0x3b1   :  { %v1006_v5 = vmul.f32 %v1548_v30, %v2233_v28 }
 0x3b2   :  { %v1550_v34 = vpop.eup %1549 }
 0x3b3   :  { %1062 = vst.msk [vmem:[%s2381_s6 + $0xb0] sm:$0xff] %vm1013_vm1, %v1006_v5  ;;  %v1008_v17 = vmul.f32 %v1550_v34, %v2236_v37 }
 0x3b5   :  { %1063 = vst.msk [vmem:[%s2381_s6 + $0xb8] sm:$0xff] %vm1013_vm1, %v1008_v17 }
 0x3b8   :  { %v1552_v6 = vpop.eup %1551 }
 0x3b9   :  { %v1010_v50 = vmul.f32 %v1552_v6, %v2239_v29 }
 0x3ba   :  { %v1554_v41 = vpop.eup %1553 }
 0x3bb   :  { %1064 = vst.msk [vmem:[%s2381_s6 + $0xc0] sm:$0xff] %vm1013_vm1, %v1010_v50  ;;  %v1012_v28 = vmul.f32 %v1554_v41, %v2242_v20 }
 0x3bd   :  { %1065 = vst.msk [vmem:[%s2381_s6 + $0xc8] sm:$0xff] %vm1013_vm1, %v1012_v28 }
 0x3be   :  { %1074 = vsyncpa [#allocation3], 1 }
 0x3bf   :  { %1075 = vsyncpa [#allocation5], 1 }

</bundles_post_ra>
